<compile_context>
chip_gen: v7x
topology: tpu7x:2x2x1
jax: 0.10.0
libtpu: 0.0.40
codegen_flags: <defaults>
</compile_context>

<pallas_src>
import functools

import jax
import jax.numpy as jnp
from jax import lax
from jax.experimental import pallas as pl
from jax.experimental.pallas import tpu as pltpu


def _ce2d_kernel(logits_ref, tgt_ref, out_ref, *, tile_hw, n_hw):
    j = pl.program_id(1)  # pixel-tile index (reduction axis, "arbitrary")

    @pl.when(j == 0)
    def _():
        out_ref[...] = jnp.zeros_like(out_ref)

    # (C, T): classes on sublanes, pixels on lanes. Upcast in-kernel (bf16-safe).
    x = logits_ref[0].astype(jnp.float32)

    m = jnp.max(x, axis=0, keepdims=True)                     # (1, T)
    shifted = x - m
    lse = jnp.log(jnp.sum(jnp.exp(shifted), axis=0, keepdims=True))  # (1, T)

    # Gather shifted[target] via one-hot over the class (sublane) axis.
    tgt = tgt_ref[0]                                          # (1, T) int32
    cls = lax.broadcasted_iota(jnp.int32, x.shape, 0)         # (C, T)
    picked = jnp.sum(jnp.where(cls == tgt, shifted, 0.0),
                     axis=0, keepdims=True)                   # (1, T)
    logp_t = picked - lse                                     # log p[target]

    # Mask pixels past the real H*W (partial last block -> garbage lanes).
    # NOTE: keep this mask AFTER the gather so garbage targets are harmless.
    pix = lax.broadcasted_iota(jnp.int32, logp_t.shape, 1) + j * tile_hw
    logp_t = jnp.where(pix < n_hw, logp_t, 0.0)

    out_ref[...] += jnp.reshape(-jnp.sum(logp_t), (1, 1, 1))


def cross_entropy_loss_2d(outputs, targets, *, tile_hw=2048):
    """outputs: tuple (logits NCHW, aux); targets: (N, H, W) int."""
    logits, _ = outputs
    N, C, H, W = logits.shape
    HW = H * W

    # Free reshapes only; keep the logits' source dtype (bf16 stays bf16).
    x = logits.reshape(N, C, HW)
    t = targets.reshape(N, 1, HW).astype(jnp.int32)

    # Lane-dense tile: multiple of 128, or the full H*W extent as fallback.
    if HW % 128 == 0:
        tile = min(tile_hw, HW)
        tile = max(128, (tile // 128) * 128)
    else:
        tile = HW  # full-extent block (allowed even when not a multiple of 128)
    n_hw_tiles = (HW + tile - 1) // tile

    kernel = functools.partial(_ce2d_kernel, tile_hw=tile, n_hw=HW)

    itemsize = jnp.dtype(x.dtype).itemsize
    # Double-buffered logits + targets blocks, plus slack; clamp to [32, 64] MiB
    # so it is >= the default scoped limit everywhere and <= v7x physical VMEM.
    need = 2 * (tile * C * max(itemsize, 4) + tile * 4) + (2 << 20)
    vmem_limit = int(min(64 << 20, max(32 << 20, need)))

    cost = pl.CostEstimate(
        flops=int(6 * N * C * HW),
        transcendentals=int(N * C * HW + N * HW),
        bytes_accessed=int(x.size * itemsize + t.size * 4 + N * 4),
    )

    partial = pl.pallas_call(
        kernel,
        out_shape=jax.ShapeDtypeStruct((N, 1, 1), jnp.float32),
        grid_spec=pltpu.PrefetchScalarGridSpec(
            num_scalar_prefetch=0,
            grid=(N, n_hw_tiles),
            in_specs=[
                pl.BlockSpec((1, C, tile), lambda n, j: (n, 0, j)),
                pl.BlockSpec((1, 1, tile), lambda n, j: (n, 0, j)),
            ],
            out_specs=pl.BlockSpec((1, 1, 1), lambda n, j: (n, 0, 0)),
        ),
        compiler_params=pltpu.CompilerParams(
            dimension_semantics=("parallel", "arbitrary"),
            vmem_limit_bytes=vmem_limit),
        cost_estimate=cost,
    )(x, t)

    # Final reduction + mean normalization outside the kernel (scalar work).
    return jnp.sum(partial) / jnp.float32(N * HW)


def _reference(outputs, targets):
    logits, _ = outputs
    logp = jax.nn.log_softmax(logits.astype(jnp.float32), axis=1)  # (N,C,H,W)
    picked = jnp.take_along_axis(
        logp, targets[:, None, :, :].astype(jnp.int32), axis=1)[:, 0]
    return -jnp.mean(picked)


if __name__ == "__main__":
    key = jax.random.PRNGKey(0)
    k1, k2, k3 = jax.random.split(key, 3)

    N, C, H, W = 2, 4, 16, 16
    logits = jax.random.normal(k1, (N, C, H, W), dtype=jnp.float32)
    aux = jax.random.normal(k2, (N, C, H, W), dtype=jnp.float32)  # ignored
    targets = jax.random.randint(k3, (N, H, W), 0, C, dtype=jnp.int32)

    loss = cross_entropy_loss_2d((logits, aux), targets)
    loss = jax.block_until_ready(loss)

    ref = _reference((logits, aux), targets)
    assert jnp.allclose(loss, ref, atol=1e-5, rtol=1e-5), (loss, ref)

    print("KERNEL_OK")
</pallas_src>

<mosaic_0001>
module attributes {stable_mosaic.version = 11 : i64} {
  func.func @_ce2d_kernel(%arg0: i32, %arg1: i32, %arg2: memref<1x4x256xf32, #tpu.memory_space<vmem>>, %arg3: memref<1x1x256xi32, #tpu.memory_space<vmem>>, %arg4: memref<1x1x1xf32, #tpu.memory_space<vmem>>) attributes {dimension_semantics = [#tpu.dimension_semantics<parallel>, #tpu.dimension_semantics<arbitrary>], iteration_bounds = array<i64: 2, 1>, scalar_prefetch = 0 : i64, scratch_operands = 0 : i64, tpu.core_type = #tpu.core_type<tc>, window_params = [{transform_indices = @transform_0, window_bounds = array<i64: 1, 4, 256>}, {transform_indices = @transform_1, window_bounds = array<i64: 1, 1, 256>}, {transform_indices = @transform_2, window_bounds = array<i64: 1, 1, 1>}]} {
    %c0_i32 = arith.constant 0 : i32
    %0 = arith.cmpi eq, %arg1, %c0_i32 : i32
    %1 = arith.extui %0 : i1 to i32
    %c0_i32_0 = arith.constant 0 : i32
    %2 = arith.cmpi ne, %1, %c0_i32_0 : i32
    scf.if %2 {
      %cst_19 = arith.constant 0.000000e+00 : f32
      %40 = vector.broadcast %cst_19 : f32 to vector<1x1x1xf32>
      %c0_20 = arith.constant 0 : index
      %c0_21 = arith.constant 0 : index
      %c0_22 = arith.constant 0 : index
      %41 = vector.load %arg4[%c0_20, %c0_21, %c0_22] : memref<1x1x1xf32, #tpu.memory_space<vmem>>, vector<1x1x1xf32>
      tpu.vector_store %arg4[%c0_20, %c0_21, %c0_22], %40 {strides = array<i32>} : memref<1x1x1xf32, #tpu.memory_space<vmem>>, vector<1x1x1xf32>,
    } else {
    }
    %c0 = arith.constant 0 : index
    %c0_1 = arith.constant 0 : index
    %c0_2 = arith.constant 0 : index
    %3 = vector.load %arg2[%c0, %c0_1, %c0_2] : memref<1x4x256xf32, #tpu.memory_space<vmem>>, vector<1x4x256xf32>
    %4 = vector.shape_cast %3 : vector<1x4x256xf32> to vector<4x256xf32>
    %cst = arith.constant dense<0xFF800000> : vector<256xf32>
    %5 = vector.multi_reduction <maximumf>, %4, %cst [0] : vector<4x256xf32> to vector<256xf32>
    %6 = vector.shape_cast %5 : vector<256xf32> to vector<1x256xf32>
    %7 = vector.broadcast %6 : vector<1x256xf32> to vector<4x256xf32>
    %8 = arith.subf %4, %7 : vector<4x256xf32>
    %9 = math.exp %8 : vector<4x256xf32>
    %cst_3 = arith.constant dense<0.000000e+00> : vector<256xf32>
    %10 = vector.multi_reduction <add>, %9, %cst_3 [0] : vector<4x256xf32> to vector<256xf32>
    %11 = vector.shape_cast %10 : vector<256xf32> to vector<1x256xf32>
    %12 = math.log %11 : vector<1x256xf32>
    %c0_4 = arith.constant 0 : index
    %c0_5 = arith.constant 0 : index
    %c0_6 = arith.constant 0 : index
    %13 = vector.load %arg3[%c0_4, %c0_5, %c0_6] : memref<1x1x256xi32, #tpu.memory_space<vmem>>, vector<1x1x256xi32>
    %14 = vector.shape_cast %13 : vector<1x1x256xi32> to vector<1x256xi32>
    %15 = tpu.iota {dimensions = array<i32: 0>} : vector<4x256xi32>
    %16 = vector.broadcast %14 : vector<1x256xi32> to vector<4x256xi32>
    %17 = arith.cmpi eq, %15, %16 : vector<4x256xi32>
    %cst_7 = arith.constant 0.000000e+00 : f32
    %18 = vector.broadcast %cst_7 : f32 to vector<4x256xf32>
    %19 = arith.select %17, %8, %18 : vector<4x256xi1>, vector<4x256xf32>
    %cst_8 = arith.constant dense<0.000000e+00> : vector<256xf32>
    %20 = vector.multi_reduction <add>, %19, %cst_8 [0] : vector<4x256xf32> to vector<256xf32>
    %21 = vector.shape_cast %20 : vector<256xf32> to vector<1x256xf32>
    %22 = arith.subf %21, %12 : vector<1x256xf32>
    %23 = tpu.iota {dimensions = array<i32: 1>} : vector<1x256xi32>
    %c256_i32 = arith.constant 256 : i32
    %24 = arith.muli %arg1, %c256_i32 : i32
    %25 = vector.broadcast %24 : i32 to vector<1x256xi32>
    %26 = arith.addi %23, %25 : vector<1x256xi32>
    %c256_i32_9 = arith.constant 256 : i32
    %27 = vector.broadcast %c256_i32_9 : i32 to vector<1x256xi32>
    %28 = arith.cmpi slt, %26, %27 : vector<1x256xi32>
    %cst_10 = arith.constant 0.000000e+00 : f32
    %29 = vector.broadcast %cst_10 : f32 to vector<1x256xf32>
    %30 = arith.select %28, %22, %29 : vector<1x256xi1>, vector<1x256xf32>
    %c0_11 = arith.constant 0 : index
    %c0_12 = arith.constant 0 : index
    %c0_13 = arith.constant 0 : index
    %31 = vector.load %arg4[%c0_11, %c0_12, %c0_13] : memref<1x1x1xf32, #tpu.memory_space<vmem>>, vector<1x1x1xf32>
    %32 = vector.shape_cast %30 : vector<1x256xf32> to vector<1x1x256xf32>
    %cst_14 = arith.constant dense<0.000000e+00> : vector<1xf32>
    %33 = vector.multi_reduction <add>, %32, %cst_14 [1, 2] : vector<1x1x256xf32> to vector<1xf32>
    %34 = vector.shape_cast %33 : vector<1xf32> to vector<1x1x1xf32>
    %35 = vector.extract %34[0, 0, 0] : f32 from vector<1x1x1xf32>
    %cst_15 = arith.constant 0.000000e+00 : f32
    %36 = arith.subf %cst_15, %35 : f32
    %37 = vector.broadcast %36 : f32 to vector<1x1x1xf32>
    %38 = arith.addf %31, %37 : vector<1x1x1xf32>
    %c0_16 = arith.constant 0 : index
    %c0_17 = arith.constant 0 : index
    %c0_18 = arith.constant 0 : index
    %39 = vector.load %arg4[%c0_16, %c0_17, %c0_18] : memref<1x1x1xf32, #tpu.memory_space<vmem>>, vector<1x1x1xf32>
    tpu.vector_store %arg4[%c0_16, %c0_17, %c0_18], %38 {strides = array<i32>} : memref<1x1x1xf32, #tpu.memory_space<vmem>>, vector<1x1x1xf32>,
    return
  }
  func.func @transform_0(%arg0: i32, %arg1: i32) -> (i32, i32, i32) {
    %c0_i32 = arith.constant 0 : i32
    %c0_i32_0 = arith.constant 0 : i32
    return %arg0, %c0_i32, %arg1 : i32, i32, i32
  }
  func.func @transform_1(%arg0: i32, %arg1: i32) -> (i32, i32, i32) {
    %c0_i32 = arith.constant 0 : i32
    %c0_i32_0 = arith.constant 0 : i32
    return %arg0, %c0_i32, %arg1 : i32, i32, i32
  }
  func.func @transform_2(%arg0: i32, %arg1: i32) -> (i32, i32, i32) {
    %c0_i32 = arith.constant 0 : i32
    %c0_i32_0 = arith.constant 0 : i32
    %c0_i32_1 = arith.constant 0 : i32
    return %arg0, %c0_i32, %c0_i32_0 : i32, i32, i32
  }
}

</mosaic_0001>

<bundles_post_ra>
// kernel: tpu_custom_call.1
= control target key start
LH: loop header
LB: loop body
LE: loop exit
PB: predicated region body
PF: predicated region fallthrough
CT: control target
= control target key end

     0   :  { %7 = vsyncpa [#allocation3], 0  ;;  %s826_s0 = inlined_call_operand.hbm [shape: f32[2,4,256], index: 0, kind: input, shape index: {}]   ;;  %s827_s1 = inlined_call_operand.hbm [shape: s32[2,1,256], index: 1, kind: input, shape index: {}]   ;;  %s828_s2 = inlined_call_operand.vmem [shape: f32[2,1,1], index: 2, kind: output, shape index: {}]  }
   0x1   :  { %9 = vsyncpa [#allocation3 + $0x1], 0 }
   0x2   :  { %10 = vsyncpa [#allocation5], 0 }
   0x3   :  { %12 = vsyncpa [#allocation5 + $0x1], 0  ;;  %s652_s9 = smov 0   ;;  %s654_s10 = smov 0  }
   0x4   :  { %s656_s11 = smov 0   ;;  %s658_s12 = smov 0  }
   0x5   :  { %s660_s13 = smov 0   ;;  %s662_s14 = smov 0  }
   0x6 LB: > { %s431_s15 = sadd.s32 4294967295, %s632_s14   ;;  %s30_s16 = sadd.s32 1, %s628_s13  ;;  %s632_s14 = sphi %s662_s14, %s18_s14   ;;  %s628_s13 = sphi %s660_s13, %s842_s13   ;;  %s624_s12 = sphi %s658_s12, %s841_s12   ;;  %s620_s11 = sphi %s656_s11, %s840_s11   ;;  %s616_s10 = sphi %s654_s10, %s839_s10   ;;  %s612_s9 = sphi %s652_s9, %s838_s9  }
   0x7   : > { %p32_p0 = scmp.ge.s32.totalorder %s30_s16, 2  ;;  %s39_s17 = sadd.s32 1, %s620_s11 }
   0x8   : > { %p46_p1 = scmp.ne.s32.totalorder %s620_s11, %s616_s10  ;;  %p47_p2 = scmp.eq.s32.totalorder %s632_s14, 0 }
   0x9   : > { %s844_s16 = smov (%p32_p0, %s30_s16), 0  ;;  %p52_p4 = scmp.ne.s32.totalorder %s616_s10, %s612_s9 }
   0xa   : > { %p688_p3 = por %p47_p2, %p46_p1  ;;  %s34_s19 = ssub.s32 %s628_s13, %s844_s16 }
   0xb   : > { %p53_p5 = scmp.eq.s32.totalorder %s431_s15, 0  ;;  %p37_p6 = scmp.eq.s32.totalorder %s34_s19, 0 }
   0xc   : > { %p461_p8 = scmp.lt.s32.totalorder %s632_s14, 2  ;;  %s704_s22 = sand.u32 1, %s620_s11  }
   0xd   : > { %p695_p7 = por %p53_p5, %p52_p4  ;;  %s446_s23 = sshll.u32 %s628_s13, 7 }
   0xe   : > { %s701_s21 = scalar_select %p37_p6, %s620_s11, %s39_s17  }
   0xf   : > { %s831_s20 = scalar_select %p695_p7, 1, 0 }
  0x10   : > { %s435_s24 = sshll.u32 %s704_s22, 3  ;;  %s711_s27 = scalar_lea.hbm %s826_s0, %s446_s23 }
  0x11   : > { %s134_s28 = scalar_lea.vmem [#allocation2], %s435_s24  ;;  %p715_p9 = pnand %p461_p8, %p688_p3 }
  0x12   : > { %s144_s29 = sshll.u32 %s134_s28, 4  ;;  %s131_s3 = scalar_lea.sflag [#allocation3], %s704_s22  ;;  %s719_s29 = int_to_ptr.vmem [resolvable:$true] %s144_s29 }
  0x13   : > { %s518_s4 = scalar_lea.hbm %s711_s27, 128  ;;  %p520_p13 = pneg %p715_p9 }
  0x14   : > { %p519_p12 = scmp.ne.s32.totalorder %s711_s27, %s518_s4  ;;  %s523_s7 = scalar_lea.hbm %s826_s0, 256 }
  0x15   : > { %p524_p2 = scmp.lt.u32.totalorder %s711_s27, %s826_s0  ;;  %p525_p3 = scmp.lt.u32.totalorder %s523_s7, %s518_s4 }
  0x16   : > { %p521_p0 = pnand %p520_p13, %p519_p12  ;;  %p527_p5 = scmp.lt.u32.totalorder %s518_s4, %s711_s27 }
  0x17   : > { %p526_p4 = por %p525_p3, %p524_p2 }
  0x18   : > { %p522_p1 = pneg %p521_p0 }
  0x19   : > { %p528_p6 = por %p527_p5, %p526_p4 }
  0x1b   : > { %p529_p8 = pnand %p528_p6, %p522_p1 }
  0x1d   : > { %532 = shalt.err (!%p529_p8)
}
  0x1e   : > { %s533_s15 = scalar_lea.vmem %s719_s29, 128  ;;  %s634_s17 = smov [#allocation2]  }
  0x1f   : > { %p534_p12 = scmp.ne.s32.totalorder %s719_s29, %s533_s15  ;;  %s538_s18 = sshll.u32 %s634_s17, 4  ;;  %s539_s18 = int_to_ptr.vmem [resolvable:$false] %s538_s18 }
  0x20   : > { %s540_s19 = scalar_lea.vmem %s539_s18, 256  ;;  %p541_p11 = scmp.lt.s32.totalorder %s719_s29, %s539_s18 }
  0x21   : > { %p536_p0 = pnand %p534_p12, %p520_p13  ;;  %p542_p2 = scmp.lt.s32.totalorder %s540_s19, %s533_s15 }
  0x23   : > { %p537_p10 = pneg %p536_p0  ;;  %p543_p3 = por %p542_p2, %p541_p11 }
  0x25   : > { %p544_p4 = pnand %p543_p3, %p537_p10 }
  0x27   : > { %547 = shalt.err (!%p544_p4)
}
  0x28   : > { %457 = dma.hbm_to_vmem [thread:$0]  (!%p715_p9), %s711_s27, 128, %s719_s29, %s131_s3  }
  0x29   : > { %p833_p1 = scmp.lt.s32.totalorder %s632_s14, 3  ;;  %p834_p5 = scmp.ge.s32.totalorder %s632_s14, 1 }
  0x2a   : > { %s438_s24 = sshll.u32 %s704_s22, 1  ;;  %s447_s25 = sshll.u32 %s628_s13, 5 }
  0x2b   : > { %p753_p6 = pnand %p834_p5, %p833_p1  ;;  %s762_s4 = scalar_lea.hbm %s827_s1, %s447_s25 }
  0x2c   : > { %s155_s5 = scalar_lea.vmem [#allocation4], %s438_s24  ;;  %s152_s27 = scalar_lea.sflag [#allocation5], %s704_s22 }
  0x2d   : > { %s835_s23 = scalar_select %p753_p6, 1, 0 }
  0x2e   : > { %s165_s6 = sshll.u32 %s155_s5, 4  ;;  %s548_s29 = scalar_lea.hbm %s762_s4, 32  ;;  %s166_s6 = int_to_ptr.vmem [resolvable:$true] %s165_s6 }
  0x2f   : > { %p549_p10 = scmp.ne.s32.totalorder %s762_s4, %s548_s29  ;;  %s553_s8 = scalar_lea.hbm %s827_s1, 64 }
  0x30   : > { %p554_p12 = scmp.lt.u32.totalorder %s762_s4, %s827_s1  ;;  %p555_p0 = scmp.lt.u32.totalorder %s553_s8, %s548_s29 }
  0x31   : > { %p551_p11 = pnand %p549_p10, %p520_p13  ;;  %p557_p3 = scmp.lt.u32.totalorder %s548_s29, %s762_s4 }
  0x32   : > { %p556_p2 = por %p555_p0, %p554_p12 }
  0x33   : > { %p552_p8 = pneg %p551_p11 }
  0x34   : > { %p558_p4 = por %p557_p3, %p556_p2 }
  0x36   : > { %p559_p1 = pnand %p558_p4, %p552_p8 }
  0x38   : > { %562 = shalt.err (!%p559_p1)
}
  0x39   : > { %s563_s22 = scalar_lea.vmem %s166_s6, 32  ;;  %s635_s17 = smov [#allocation4]  }
  0x3a   : > { %p564_p5 = scmp.ne.s32.totalorder %s166_s6, %s563_s22  ;;  %s568_s18 = sshll.u32 %s635_s17, 4  ;;  %s569_s18 = int_to_ptr.vmem [resolvable:$false] %s568_s18 }
  0x3b   : > { %s570_s19 = scalar_lea.vmem %s569_s18, 64  ;;  %p571_p7 = scmp.lt.s32.totalorder %s166_s6, %s569_s18 }
  0x3c   : > { %p566_p10 = pnand %p564_p5, %p520_p13  ;;  %p572_p6 = scmp.lt.s32.totalorder %s570_s19, %s563_s22 }
  0x3e   : > { %p567_p11 = pneg %p566_p10  ;;  %p573_p0 = por %p572_p6, %p571_p7 }
  0x40   : > { %p574_p12 = pnand %p573_p0, %p567_p11 }
  0x42   : > { %577 = shalt.err (!%p574_p12)
}
  0x43   : > { %460 = dma.hbm_to_vmem [thread:$0]  (!%p715_p9), %s762_s4, 32, %s166_s6, %s152_s27  }
  0x44   : > { %p836_p8 = scmp.ne.s32.totalorder %s835_s23, 0 }
  0x45   : > { %s176_s24 = sand.u32 (!%p836_p8), 1, %s616_s10   ;;  %p837_p13 = scmp.ne.s32.totalorder (!%p836_p8), %s831_s20, 0 }
  0x46   : > { %174 = sbr.rel (%p836_p8) target bundleno = 357 (0x165), region = 28  ;;  %s442_s25 = sshll.u32 (!%p836_p8), %s176_s24, 3 }
  0x47   : > { %s177_s26 = scalar_lea.sflag (!%p836_p8), [#allocation3], %s176_s24  ;;  %s180_s28 = scalar_lea.vmem (!%p836_p8), [#allocation2], %s442_s25 }
  0x4d   : > { %603 = dma.done.wait (%p837_p13), %s177_s26, 128  }
  0x4e   : > { %605 = vsyncadd (%p837_p13), %s177_s26, 4294967168  ;;  %s443_s5 = sshll.u32 %s176_s24, 1  ;;  %s186_s29 = scalar_lea.sflag [#allocation5], %s176_s24 }
  0x4f   : > { %s189_s30 = scalar_lea.vmem [#allocation4], %s443_s5 }
  0x50   : > { %607 = dma.done.wait (%p837_p13), %s186_s29, 32  }
  0x51   : > { %609 = vsyncadd (%p837_p13), %s186_s29, 4294967264  ;;  %vm228_vm0 = vcmask 1043456   ;;  %v224_v0 = vld [vmem:[%s180_s28] sm:$0xff]  ;;  %v272_v13 = vlaneseq  ;;  %v271_v21 = vld [vmem:[%s189_s30] sm:$0x3]  ;;  %vm317_vm3 = vcmask 1040384  }
  0x52   : > { %v226_v1 = vcombine.high %v224_v0, %v224_v0  ;;  %v229_v2 = vsel %vm228_vm0, %v224_v0, -inf  ;;  %p215_p7 = scmp.lt.s32.totalorder %s624_s12, 1  ;;  %vm222_vm4 = vcmask 0  }
  0x53   : > { %v230_v3 = vrot.slane %v229_v2, 4  ;;  %v273_v17 = vshrl.u32 %v272_v13, 7 }
  0x54   : > { %v236_v4 = vsel %vm228_vm0, %v226_v1, -inf  ;;  %s846_s12 = smov (!%p215_p7, %s624_s12), 1 }
  0x55   : > { %v231_v5 = vmax.f32 %v229_v2, %v230_v3  ;;  %v237_v6 = vrot.slane %v236_v4, 4  ;;  %v276_v20 = vsub.s32 0, %v273_v17  ;;  %v280_v23 = vsub.s32 1, %v273_v17  ;;  %s217_s4 = scalar_lea.vmem %s828_s2, %s846_s12 }
  0x57   : > { %v232_v7 = vrot.slane %v231_v5, 2  ;;  %v238_v8 = vmax.f32 %v236_v4, %v237_v6  ;;  %v277_v24 = vrot.slane %v271_v21, %v276_v20  ;;  %v281_v25 = vrot.slane %v271_v21, %v280_v23 }
  0x58   : > { %v636_v4 = vmov 0.0  }
  0x59   : > { %v233_v9 = vmax.f32 %v231_v5, %v232_v7  ;;  %v239_v10 = vrot.slane %v238_v8, 2  ;;  %vm282_vm1 = vcmp.eq.s32.totalorder %v273_v17, %v277_v24  ;;  %vm283_vm2 = vcmp.eq.s32.totalorder %v273_v17, %v281_v25  ;;  %223 = vst.msk [vmem:[%s217_s4] sm:$0x1] %vm222_vm4, %v636_v4 }
  0x5b   : > { %v234_v11 = vrot.slane %v233_v9, 1  ;;  %v240_v12 = vmax.f32 %v238_v8, %v239_v10 }
  0x5d   : > { %v235_v14 = vmax.f32 %v233_v9, %v234_v11  ;;  %v241_v15 = vrot.slane %v240_v12, 1 }
  0x5f   : > { %v242_v16 = vmax.f32 %v240_v12, %v241_v15 }
  0x60   : > { %v316_v12 = vld [vmem:[%s217_s4] sm:$0x1] }
  0x61   : > { %v245_v18 = vcombine.low %v235_v14, %v242_v16 }
  0x63   : > { %v247_v19 = vsub.f32 %v224_v0, %v245_v18 }
  0x65   : > { %v248_v22 = vmul.f32 1.442695, %v247_v19  ;;  %v285_v26 = vcombine.high %v247_v19, %v247_v19  ;;  %v287_v27 = vsel %vm282_vm1, %v247_v19, 0.0 }
  0x66   : > { %v289_v30 = vsel %vm228_vm0, %v287_v27, 0.0 }
  0x67   : > { %512 = vpow2.f32 %v248_v22  ;;  %v288_v28 = vsel %vm283_vm2, %v285_v26, 0.0  ;;  %v290_v36 = vrot.slane %v289_v30, 4 }
  0x68   : > { %v296_v34 = vsel %vm228_vm0, %v288_v28, 0.0 }
  0x69   : > { %v297_v39 = vrot.slane %v296_v34, 4  ;;  %v291_v42 = vadd.f32 %v290_v36, %v289_v30 }
  0x6b   : > { %v298_v45 = vadd.f32 %v297_v39, %v296_v34  ;;  %v292_v48 = vrot.slane %v291_v42, 2 }
  0x6d   : > { %v299_v51 = vrot.slane %v298_v45, 2  ;;  %v293_v53 = vadd.f32 %v292_v48, %v291_v42 }
  0x6f   : > { %v300_v54 = vadd.f32 %v299_v51, %v298_v45  ;;  %v294_v55 = vrot.slane %v293_v53, 1 }
  0x71   : > { %v513_v29 = vpop.eup %512  ;;  %v301_v56 = vrot.slane %v300_v54, 1  ;;  %v295_v57 = vadd.f32 %v294_v55, %v293_v53 }
  0x72   : > { %v251_v31 = vcombine.high %v513_v29, %v513_v29  ;;  %v253_v32 = vsel %vm228_vm0, %v513_v29, 0.0 }
  0x73   : > { %v254_v33 = vrot.slane %v253_v32, 4  ;;  %v302_v60 = vadd.f32 %v301_v56, %v300_v54 }
  0x74   : > { %v260_v35 = vsel %vm228_vm0, %v251_v31, 0.0 }
  0x75   : > { %v255_v37 = vadd.f32 %v254_v33, %v253_v32  ;;  %v261_v38 = vrot.slane %v260_v35, 4 }
  0x77   : > { %v256_v40 = vrot.slane %v255_v37, 2  ;;  %v262_v41 = vadd.f32 %v261_v38, %v260_v35 }
  0x79   : > { %v257_v43 = vadd.f32 %v256_v40, %v255_v37  ;;  %v263_v44 = vrot.slane %v262_v41, 2 }
  0x7b   : > { %v258_v46 = vrot.slane %v257_v43, 1  ;;  %v264_v47 = vadd.f32 %v263_v44, %v262_v41 }
  0x7d   : > { %v259_v49 = vadd.f32 %v258_v46, %v257_v43  ;;  %v265_v50 = vrot.slane %v264_v47, 1 }
  0x7f   : > { %v266_v52 = vadd.f32 %v265_v50, %v264_v47  ;;  %514 = vlog2.f32 %v259_v49 }
  0x81   : > { %516 = vlog2.f32 %v266_v52 }
  0x89   : > { %v515_v58 = vpop.eup %514 }
  0x8a   : > { %v268_v59 = vmul.f32 0.6931472, %v515_v58 }
  0x8b   : > { %v517_v61 = vpop.eup %516 }
  0x8c   : > { %v270_v62 = vmul.f32 0.6931472, %v517_v61  ;;  %v303_v63 = vsub.f32 %v295_v57, %v268_v59 }
  0x8e   : > { %v304_v0 = vsub.f32 %v302_v60, %v270_v62  ;;  %v318_v1 = vsel %vm317_vm3, %v303_v63, 0.0 }
  0x90   : > { %v319_v2 = vsel %vm317_vm3, %v304_v0, 0.0 }
  0x91   : > { %v320_v3 = vadd.f32 %v319_v2, %v318_v1 }
  0x93   : > { %321 = vadd.xlane.f32.xlu0 %v320_v3 }
 0x120   : > { %v322_v5 = vpop.xlane.xlu0 %321 }
 0x121   : > { %v323_v6 = vrot.slane %v322_v5, 4 }
 0x123   : > { %v324_v7 = vadd.f32 %v323_v6, %v322_v5 }
 0x125   : > { %v325_v8 = vrot.slane %v324_v7, 2 }
 0x127   : > { %v326_v9 = vadd.f32 %v325_v8, %v324_v7 }
 0x129   : > { %v327_v10 = vrot.slane %v326_v9, 1 }
 0x12b   : > { %v328_v11 = vadd.f32 %v327_v10, %v326_v9 }
 0x12d   : > { %448 = vpush %v328_v11 }
 0x15e   : > { %s449_s6 = spop %448 }
 0x15f   : > { %s330_s27 = ssub.f32 0.0, %s449_s6 }
 0x161   : > { %v331_v13 = vstv %s330_s27 }
 0x162   : > { %v332_v14 = vadd.f32 %v331_v13, %v316_v12 }
 0x164   : > { %334 = vst.msk [vmem:[%s217_s4] sm:$0x1] %vm222_vm4, %v332_v14 }
 0x165 PF: > { %s18_s14 = sadd.s32 1, %s632_s14   ;;  %s838_s9 = smov %s616_s10 }
 0x166   : > { %p15_p9 = scmp.ge.s32.totalorder %s18_s14, 4   ;;  %s839_s10 = smov %s620_s11 }
 0x167   : > { %s840_s11 = smov %s701_s21  ;;  %s841_s12 = smov %s628_s13 }
 0x168   : > { %s842_s13 = smov %s844_s16  ;;  %17 = sbr.rel (!%p15_p9) target bundleno = 6 (0x6), region = 85 }
 0x16f   :  { %352 = vsyncpa [#allocation3], 1 }
 0x170   :  { %354 = vsyncpa [#allocation3 + $0x1], 1 }
 0x171   :  { %355 = vsyncpa [#allocation5], 1 }
 0x172   :  { %357 = vsyncpa [#allocation5 + $0x1], 1 }

</bundles_post_ra>
